<compile_context>
chip_gen: v6e
topology: v6e:2x2x1
jax: 0.10.0
libtpu: 0.0.40
codegen_flags: <defaults>
</compile_context>

<pallas_src>
import jax
import jax.numpy as jnp
from jax.experimental import pallas as pl
from jax.experimental.pallas import tpu as pltpu


def _valuenet_kernel(x_ref, w1_ref, b1_ref, w2_ref, b2_ref, w3r_ref, b3_ref,
                     out_ref):
    """Fused MLP(tanh) x2 + value head for one (TILE_B, obs_dim) batch tile."""
    x = x_ref[...]                                     # (TILE_B, obs_dim) bf16
    # layer 1: Linear (bf16 MXU, f32 accumulate) + bias + Tanh in f32
    h = jnp.tanh(
        jnp.dot(x, w1_ref[...], preferred_element_type=jnp.float32)
        + b1_ref[...])
    # layer 2: Linear + Tanh   (activate_last=True)
    h = jnp.tanh(
        jnp.dot(h.astype(jnp.bfloat16), w2_ref[...],
                preferred_element_type=jnp.float32)
        + b2_ref[...])
    # value head Linear(hidden -> 1) as a lane reduction (XLU) instead of an
    # N=1 MXU matmul; w3r_ref is the head weight reshaped to (1, hidden).
    v = jnp.sum(h * w3r_ref[...], axis=-1, keepdims=True) + b3_ref[...]
    out_ref[...] = v


def _round_up(x, m):
    return (x + m - 1) // m * m


def value_net_forward(obs, params, *, max_tile_b=2048):
    """obs: [B, obs_dim] float32 -> returns [B] float32 (squeezed value)."""
    B, obs_dim = obs.shape
    w1, b1, w2, b2, w3, b3 = params
    h1 = w1.shape[1]
    h2 = w2.shape[1]

    # Batch tiling: big tiles amortize per-step overhead; pad B so the tile
    # divides it evenly (extra rows are discarded after the call).
    if B <= max_tile_b:
        tile_b = _round_up(B, 8)
        b_pad = tile_b
    else:
        tile_b = max_tile_b
        b_pad = _round_up(B, tile_b)
    if b_pad != B:
        obs = jnp.pad(obs, ((0, b_pad - B), (0, 0)))
    grid = (b_pad // tile_b,)

    # bf16 on the MXU inputs (obs dominates HBM traffic); everything else f32.
    obs_bf = obs.astype(jnp.bfloat16)
    w1_bf = w1.astype(jnp.bfloat16)
    w2_bf = w2.astype(jnp.bfloat16)
    w3_row = w3.reshape(1, h2).astype(jnp.float32)     # (1, h2)
    b3_2d = b3.reshape(1, 1).astype(jnp.float32)

    cost = pl.CostEstimate(
        flops=2 * b_pad * (obs_dim * h1 + h1 * h2 + h2),
        transcendentals=b_pad * (h1 + h2),
        bytes_accessed=(b_pad * obs_dim * 2 + b_pad * 4
                        + obs_dim * h1 * 2 + h1 * h2 * 2
                        + (h1 + h2 + h2 + 1) * 4),
    )

    out = pl.pallas_call(
        _valuenet_kernel,
        out_shape=jax.ShapeDtypeStruct((b_pad, 1), jnp.float32),
        grid=grid,
        in_specs=[
            pl.BlockSpec((tile_b, obs_dim), lambda i: (i, 0)),   # obs tile
            pl.BlockSpec((obs_dim, h1), lambda i: (0, 0)),       # w1 (resident)
            pl.BlockSpec((1, h1), lambda i: (0, 0)),             # b1
            pl.BlockSpec((h1, h2), lambda i: (0, 0)),            # w2
            pl.BlockSpec((1, h2), lambda i: (0, 0)),             # b2
            pl.BlockSpec((1, h2), lambda i: (0, 0)),             # w3 row
            pl.BlockSpec((1, 1), lambda i: (0, 0)),              # b3
        ],
        out_specs=pl.BlockSpec((tile_b, 1), lambda i: (i, 0)),
        compiler_params=pltpu.CompilerParams(
            dimension_semantics=("parallel",)),
        cost_estimate=cost,
    )(obs_bf, w1_bf, b1, w2_bf, b2, w3_row, b3_2d)

    # glue: drop batch padding and squeeze(-1) as in torch.squeeze(..., -1)
    return jnp.squeeze(out[:B], axis=-1)


def init_params(key, obs_dim, hidden_sizes):
    """Orthogonal weights, zero biases (matches ValueNet.init_params)."""
    sizes = [obs_dim] + list(hidden_sizes) + [1]
    orth = jax.nn.initializers.orthogonal(scale=1.0)
    params = []
    keys = jax.random.split(key, len(sizes) - 1)
    for k, (fan_in, fan_out) in zip(keys, zip(sizes[:-1], sizes[1:])):
        w = orth(k, (fan_in, fan_out), jnp.float32)    # stored [in, out]
        b = jnp.zeros((1, fan_out), jnp.float32)
        params.extend([w, b])
    return tuple(params)


def value_net_reference_f32(obs, params):
    """Pure-JAX f32 reference of the same forward pass."""
    w1, b1, w2, b2, w3, b3 = params
    h = jnp.tanh(obs @ w1 + b1)
    h = jnp.tanh(h @ w2 + b2)
    v = h @ w3 + b3
    return jnp.squeeze(v, axis=-1)


def value_net_reference_bf16(obs, params):
    """Pure-JAX reference emulating the kernel's bf16 matmul inputs."""
    w1, b1, w2, b2, w3, b3 = params
    bf = jnp.bfloat16
    h = jnp.tanh(jnp.dot(obs.astype(bf), w1.astype(bf),
                         preferred_element_type=jnp.float32) + b1)
    h = jnp.tanh(jnp.dot(h.astype(bf), w2.astype(bf),
                         preferred_element_type=jnp.float32) + b2)
    v = jnp.sum(h * w3.reshape(1, -1), axis=-1, keepdims=True) + b3.reshape(1, 1)
    return jnp.squeeze(v, axis=-1)


if __name__ == "__main__":
    key = jax.random.PRNGKey(0)
    k_obs, k_par = jax.random.split(key)

    B, obs_dim = 8, 32
    hidden_sizes = [64, 64]

    obs = jax.random.normal(k_obs, (B, obs_dim), dtype=jnp.float32)
    params = init_params(k_par, obs_dim, hidden_sizes)

    out = value_net_forward(obs, params)
    out = jax.block_until_ready(out)

    ref_bf16 = value_net_reference_bf16(obs, params)
    ref_f32 = value_net_reference_f32(obs, params)

    assert out.shape == (B,), out.shape
    # tight against a reference using the same bf16 matmul inputs
    assert jnp.allclose(out, ref_bf16, atol=1e-3, rtol=1e-3), (out, ref_bf16)
    # loose against the full-precision reference (bf16 quantization of inputs)
    assert jnp.allclose(out, ref_f32, atol=5e-2, rtol=5e-2), (out, ref_f32)

    print("KERNEL_OK")
</pallas_src>

<mosaic_0001>
module attributes {stable_mosaic.version = 11 : i64} {
  func.func @_valuenet_kernel(%arg0: i32, %arg1: memref<8x32xbf16, #tpu.memory_space<vmem>>, %arg2: memref<32x64xbf16, #tpu.memory_space<vmem>>, %arg3: memref<1x64xf32, #tpu.memory_space<vmem>>, %arg4: memref<64x64xbf16, #tpu.memory_space<vmem>>, %arg5: memref<1x64xf32, #tpu.memory_space<vmem>>, %arg6: memref<1x64xf32, #tpu.memory_space<vmem>>, %arg7: memref<1x1xf32, #tpu.memory_space<vmem>>, %arg8: memref<8x1xf32, #tpu.memory_space<vmem>>) attributes {dimension_semantics = [#tpu.dimension_semantics<parallel>], iteration_bounds = array<i64: 1>, scalar_prefetch = 0 : i64, scratch_operands = 0 : i64, tpu.core_type = #tpu.core_type<tc>, window_params = [{transform_indices = @transform_0, window_bounds = array<i64: 8, 32>}, {pipeline_mode = #tpu.pipeline_mode<synchronous>, transform_indices = @transform_1, window_bounds = array<i64: 32, 64>}, {pipeline_mode = #tpu.pipeline_mode<synchronous>, transform_indices = @transform_2, window_bounds = array<i64: 1, 64>}, {pipeline_mode = #tpu.pipeline_mode<synchronous>, transform_indices = @transform_3, window_bounds = array<i64: 64, 64>}, {pipeline_mode = #tpu.pipeline_mode<synchronous>, transform_indices = @transform_4, window_bounds = array<i64: 1, 64>}, {pipeline_mode = #tpu.pipeline_mode<synchronous>, transform_indices = @transform_5, window_bounds = array<i64: 1, 64>}, {pipeline_mode = #tpu.pipeline_mode<synchronous>, transform_indices = @transform_6, window_bounds = array<i64: 1, 1>}, {transform_indices = @transform_7, window_bounds = array<i64: 8, 1>}]} {
    %c0 = arith.constant 0 : index
    %c0_0 = arith.constant 0 : index
    %0 = vector.load %arg1[%c0, %c0_0] : memref<8x32xbf16, #tpu.memory_space<vmem>>, vector<8x32xbf16>
    %c0_1 = arith.constant 0 : index
    %c0_2 = arith.constant 0 : index
    %1 = vector.load %arg2[%c0_1, %c0_2] : memref<32x64xbf16, #tpu.memory_space<vmem>>, vector<32x64xbf16>
    %cst = arith.constant dense<0.000000e+00> : vector<8x64xf32>
    %2 = tpu.matmul %0, %1, %cst {dimension_numbers = #tpu.dot_dimension_numbers<[1], [0], [0], [1], [0, 0, 1, 1], [], []>} : vector<8x32xbf16>, vector<32x64xbf16>, vector<8x64xf32> -> vector<8x64xf32>
    %c0_3 = arith.constant 0 : index
    %c0_4 = arith.constant 0 : index
    %3 = vector.load %arg3[%c0_3, %c0_4] : memref<1x64xf32, #tpu.memory_space<vmem>>, vector<1x64xf32>
    %4 = vector.broadcast %3 : vector<1x64xf32> to vector<8x64xf32>
    %5 = arith.addf %2, %4 : vector<8x64xf32>
    %6 = math.tanh %5 : vector<8x64xf32>
    %7 = arith.truncf %6 : vector<8x64xf32> to vector<8x64xbf16>
    %c0_5 = arith.constant 0 : index
    %c0_6 = arith.constant 0 : index
    %8 = vector.load %arg4[%c0_5, %c0_6] : memref<64x64xbf16, #tpu.memory_space<vmem>>, vector<64x64xbf16>
    %cst_7 = arith.constant dense<0.000000e+00> : vector<8x64xf32>
    %9 = tpu.matmul %7, %8, %cst_7 {dimension_numbers = #tpu.dot_dimension_numbers<[1], [0], [0], [1], [0, 0, 1, 1], [], []>} : vector<8x64xbf16>, vector<64x64xbf16>, vector<8x64xf32> -> vector<8x64xf32>
    %c0_8 = arith.constant 0 : index
    %c0_9 = arith.constant 0 : index
    %10 = vector.load %arg5[%c0_8, %c0_9] : memref<1x64xf32, #tpu.memory_space<vmem>>, vector<1x64xf32>
    %11 = vector.broadcast %10 : vector<1x64xf32> to vector<8x64xf32>
    %12 = arith.addf %9, %11 : vector<8x64xf32>
    %13 = math.tanh %12 : vector<8x64xf32>
    %c0_10 = arith.constant 0 : index
    %c0_11 = arith.constant 0 : index
    %14 = vector.load %arg6[%c0_10, %c0_11] : memref<1x64xf32, #tpu.memory_space<vmem>>, vector<1x64xf32>
    %15 = vector.broadcast %14 : vector<1x64xf32> to vector<8x64xf32>
    %16 = arith.mulf %13, %15 : vector<8x64xf32>
    %cst_12 = arith.constant dense<0.000000e+00> : vector<8xf32>
    %17 = vector.multi_reduction <add>, %16, %cst_12 [1] : vector<8x64xf32> to vector<8xf32>
    %18 = vector.shape_cast %17 : vector<8xf32> to vector<8x1xf32>
    %c0_13 = arith.constant 0 : index
    %c0_14 = arith.constant 0 : index
    %19 = vector.load %arg7[%c0_13, %c0_14] : memref<1x1xf32, #tpu.memory_space<vmem>>, vector<1x1xf32>
    %20 = vector.broadcast %19 : vector<1x1xf32> to vector<8x1xf32>
    %21 = arith.addf %18, %20 : vector<8x1xf32>
    %c0_15 = arith.constant 0 : index
    %c0_16 = arith.constant 0 : index
    %22 = vector.load %arg8[%c0_15, %c0_16] : memref<8x1xf32, #tpu.memory_space<vmem>>, vector<8x1xf32>
    tpu.vector_store %arg8[%c0_15, %c0_16], %21 {strides = array<i32>} : memref<8x1xf32, #tpu.memory_space<vmem>>, vector<8x1xf32>,
    return
  }
  func.func @transform_0(%arg0: i32) -> (i32, i32) {
    %c0_i32 = arith.constant 0 : i32
    %c0_i32_0 = arith.constant 0 : i32
    return %arg0, %c0_i32 : i32, i32
  }
  func.func @transform_1(%arg0: i32) -> (i32, i32) {
    %c0_i32 = arith.constant 0 : i32
    %c0_i32_0 = arith.constant 0 : i32
    %c0_i32_1 = arith.constant 0 : i32
    return %c0_i32, %c0_i32_0 : i32, i32
  }
  func.func @transform_2(%arg0: i32) -> (i32, i32) {
    %c0_i32 = arith.constant 0 : i32
    %c0_i32_0 = arith.constant 0 : i32
    %c0_i32_1 = arith.constant 0 : i32
    return %c0_i32, %c0_i32_0 : i32, i32
  }
  func.func @transform_3(%arg0: i32) -> (i32, i32) {
    %c0_i32 = arith.constant 0 : i32
    %c0_i32_0 = arith.constant 0 : i32
    %c0_i32_1 = arith.constant 0 : i32
    return %c0_i32, %c0_i32_0 : i32, i32
  }
  func.func @transform_4(%arg0: i32) -> (i32, i32) {
    %c0_i32 = arith.constant 0 : i32
    %c0_i32_0 = arith.constant 0 : i32
    %c0_i32_1 = arith.constant 0 : i32
    return %c0_i32, %c0_i32_0 : i32, i32
  }
  func.func @transform_5(%arg0: i32) -> (i32, i32) {
    %c0_i32 = arith.constant 0 : i32
    %c0_i32_0 = arith.constant 0 : i32
    %c0_i32_1 = arith.constant 0 : i32
    return %c0_i32, %c0_i32_0 : i32, i32
  }
  func.func @transform_6(%arg0: i32) -> (i32, i32) {
    %c0_i32 = arith.constant 0 : i32
    %c0_i32_0 = arith.constant 0 : i32
    %c0_i32_1 = arith.constant 0 : i32
    return %c0_i32, %c0_i32_0 : i32, i32
  }
  func.func @transform_7(%arg0: i32) -> (i32, i32) {
    %c0_i32 = arith.constant 0 : i32
    %c0_i32_0 = arith.constant 0 : i32
    return %arg0, %c0_i32 : i32, i32
  }
}

</mosaic_0001>

<bundles_post_ra>
// kernel: tpu_custom_call.1
= control target key start
LH: loop header
LB: loop body
LE: loop exit
PB: predicated region body
PF: predicated region fallthrough
CT: control target
= control target key end

     0   :  { %s441_s0 = inlined_call_operand.hbm [shape: bf16[8,32], index: 0, kind: input, shape index: {}]   ;;  %s442_s1 = inlined_call_operand.hbm [shape: bf16[32,64], index: 1, kind: input, shape index: {}]   ;;  %s443_s2 = inlined_call_operand.vmem [shape: f32[1,64], index: 2, kind: input, shape index: {}]   ;;  %s444_s3 = inlined_call_operand.hbm [shape: bf16[64,64], index: 3, kind: input, shape index: {}]   ;;  %s445_s4 = inlined_call_operand.vmem [shape: f32[1,64], index: 4, kind: input, shape index: {}]   ;;  %s446_s5 = inlined_call_operand.vmem [shape: f32[1,64], index: 5, kind: input, shape index: {}]   ;;  %s447_s6 = inlined_call_operand.<no memory space> [shape: f32[1,1], index: 6, kind: input, shape index: {}]   ;;  %s448_s7 = inlined_call_operand.vmem [shape: f32[8,1], index: 7, kind: output, shape index: {}]  }
   0x1   :  { %v12_v0 = vstv %s447_s6 }
   0x2   :  { %13 = vst [vmem:[#allocation2] sm:$0x1] %v12_v0 }
   0x3   :  { %14 = vsyncpa [#allocation4], 0 }
   0x4   :  { %15 = vsyncpa [#allocation6], 0  ;;  %s370_s26 = smov [#allocation5]  }
   0x5   :  { %s31_s27 = sshll.u32 %s370_s26, 4  ;;  %s32_s27 = int_to_ptr.vmem [resolvable:$true] %s31_s27 }
   0x6   :  { %s314_s28 = scalar_lea.vmem %s32_s27, 256  ;;  %p319_p1 = scmp.lt.s32.totalorder %s32_s27, %s32_s27 }
   0x7   :  { %p315_p0 = scmp.ne.s32.totalorder %s32_s27, %s314_s28  ;;  %p320_p2 = scmp.lt.s32.totalorder %s314_s28, %s314_s28 }
   0x9   :  { %p321_p3 = por %p320_p2, %p319_p1 }
   0xb   :  { %p322_p4 = pnand %p321_p3, %p315_p0 }
   0xd   :  { %325 = shalt.err (!%p322_p4)
}
   0xe   :  { %s371_s29 = smov 64   ;;  %s372_s30 = smov 4  }
   0xf   :  { %37 = dma.hbm_to_vmem [thread:$0]  %s442_s1, 256, %s32_s27, [#allocation6], %s371_s29, %s371_s29, %s372_s30  }
  0x10   :  { %s373_s6 = smov [#allocation3]   ;;  %s374_s11 = smov [#allocation7]  }
  0x11   :  { %s22_s10 = sshll.u32 %s373_s6, 4  ;;  %s45_s12 = sshll.u32 %s374_s11, 4  ;;  %s23_s10 = int_to_ptr.vmem [resolvable:$true] %s22_s10  ;;  %s46_s12 = int_to_ptr.vmem [resolvable:$true] %s45_s12 }
  0x12   :  { %s334_s13 = scalar_lea.vmem %s23_s10, 64  ;;  %p339_p6 = scmp.lt.s32.totalorder %s23_s10, %s23_s10 }
  0x13   :  { %p335_p5 = scmp.ne.s32.totalorder %s23_s10, %s334_s13  ;;  %p340_p7 = scmp.lt.s32.totalorder %s334_s13, %s334_s13 }
  0x15   :  { %p341_p8 = por %p340_p7, %p339_p6 }
  0x17   :  { %p342_p9 = pnand %p341_p8, %p335_p5 }
  0x19   :  { %345 = shalt.err (!%p342_p9)
}
  0x1a   :  { %25 = dma.hbm_to_vmem [thread:$0]  %s441_s0, 64, %s23_s10, [#allocation4]  }
  0x1b   :  { %s354_s16 = scalar_lea.vmem %s46_s12, 512  ;;  %p359_p11 = scmp.lt.s32.totalorder %s46_s12, %s46_s12 }
  0x1c   :  { %p355_p10 = scmp.ne.s32.totalorder %s46_s12, %s354_s16  ;;  %p360_p12 = scmp.lt.s32.totalorder %s354_s16, %s354_s16 }
  0x1e   :  { %p361_p13 = por %p360_p12, %p359_p11 }
  0x20   :  { %p362_p0 = pnand %p361_p13, %p355_p10 }
  0x22   :  { %365 = shalt.err (!%p362_p0)
}
  0x23   :  { %51 = dma.hbm_to_vmem [thread:$0]  %s444_s3, 512, %s46_s12, [#allocation6], %s371_s29, %s371_s29, %s372_s30  }
  0x24   :  { %366 = dma.done.wait [#allocation4], 64  }
  0x25   :  { %367 = vsyncadd [#allocation4], 4294967232 }
  0x26   :  { %368 = dma.done.wait [#allocation6], 768  }
  0x27   :  { %369 = vsyncadd [#allocation6], 4294966528  ;;  %v375_v1 = vmov 0.0   ;;  %vm376_vm0 = vmmov 0   ;;  %v296_v2 = vld [vmem:[#allocation5 + $0x8] sm:$0xff]   ;;  %v297_v3 = vld [vmem:[#allocation5] sm:$0xff]  }
  0x28   :  { %269 = vmatprep.subr.bf16.mxu0 %v375_v1  ;;  %273 = vmatprep.mubr.msk.bf16.mxu0 %vm376_vm0, %v375_v1  ;;  %v68_v4 = vld [vmem:[#allocation3] sm:$0xf]  ;;  %vm92_vm1 = vcmask 261120   ;;  %v298_v5 = vld [vmem:[#allocation7 + $0x18] sm:$0xff]   ;;  %v299_v6 = vld [vmem:[#allocation7 + $0x10] sm:$0xff]   ;;  %vm177_vm2 = vcmask 523264  }
  0x29   :  { %277 = vmatprep.subr.bf16.mxu1 %v375_v1  ;;  %285 = vmatprep.mubr.msk.bf16.mxu1 %vm376_vm0, %v375_v1  ;;  %v300_v7 = vld [vmem:[#allocation7 + $0x8] sm:$0xff]   ;;  %v301_v8 = vld [vmem:[#allocation7] sm:$0xff]   ;;  %vm241_vm3 = vcmask 7168  }
  0x2a   :  { %270 = vmatpush3.bf16.msra.mxu0 %v296_v2  ;;  %278 = vmatpush3.bf16.msra.mxu1 %v298_v5  ;;  %v249_v9 = vld [vmem:[%s443_s2] ss:$0 sm:$0xff] }
  0x2b   :  { %271 = vmatprep.subr.bf16.mxu0 %v375_v1  ;;  %279 = vmatprep.subr.bf16.mxu1 %v375_v1  ;;  %v253_v17 = vld [vmem:[%s445_s4] ss:$0 sm:$0xff] }
  0x2c   :  { %v259_v23 = vld [vmem:[%s446_s5] ss:$0 sm:$0xff] }
  0x2d   :  { %v260_v27 = vld [vmem:[#allocation2] ss:$0 sm:$0xff] }
  0x2e   :  { %272 = vmatpush3.bf16.msra.mxu0 %v297_v3  ;;  %280 = vmatpush3.bf16.msra.mxu1 %v299_v6 }
  0x2f   :  { %281 = vmatprep.subr.bf16.mxu1 %v375_v1 }
  0x31   :  { %274 = vmatmul.mubr.msk.bf16.vlgmr.msra.gmra.mxu0 %vm92_vm1, %v68_v4 }
  0x32   :  { %282 = vmatpush3.bf16.msra.mxu1 %v300_v7 }
  0x33   :  { %283 = vmatprep.subr.bf16.mxu1 %v375_v1 }
  0x36   :  { %284 = vmatpush3.bf16.msra.mxu1 %v301_v8 }
  0xf1   :  { %v130_v10 = vpop.f32.mrf.mxu0 }
  0xf2   :  { %v131_v11 = vadd.f32 %v249_v9, %v130_v10 }
  0xf3   :  { %v275_v12 = vpop.f32.mrf.mxu0 }
  0xf4   :  { %302 = vtanh.f32 %v131_v11 }
  0xf5   :  { %v133_v13 = vpop.f32.mrf.mxu0 }
  0xf7   :  { %v276_v14 = vpop.f32.mrf.mxu0 }
 0x101   :  { %v303_v15 = vpop.eup %302 }
 0x102   :  { %v137_v16 = vpack.c.bf16 %v303_v15, %v303_v15 }
 0x104   :  { %286 = vmatmul.mubr.msk.bf16.vlgmr.msra.gmra.mxu1 %vm177_vm2, %v137_v16 }
 0x1c4   :  { %v215_v18 = vpop.f32.mrf.mxu1 }
 0x1c5   :  { %v216_v19 = vadd.f32 %v253_v17, %v215_v18 }
 0x1c6   :  { %v287_v20 = vpop.f32.mrf.mxu1 }
 0x1c7   :  { %304 = vtanh.f32 %v216_v19 }
 0x1c8   :  { %v218_v21 = vpop.f32.mrf.mxu1 }
 0x1ca   :  { %v288_v22 = vpop.f32.mrf.mxu1 }
 0x1d4   :  { %v305_v24 = vpop.eup %304 }
 0x1d5   :  { %v229_v25 = vmul.f32 %v305_v24, %v259_v23 }
 0x1d7   :  { %v230_v26 = vsel %vm177_vm2, %v229_v25, 0.0 }
 0x1d8   :  { %231 = vadd.xlane.f32.xlu0 %v230_v26 }
 0x261   :  { %v232_v28 = vpop.xlane.xlu0 %231 }
 0x262   :  { %v240_v29 = vadd.f32 %v260_v27, %v232_v28 }
 0x264   :  { %242 = vst.msk [vmem:[%s448_s7] sm:$0xff] %vm241_vm3, %v240_v29 }
 0x265   :  { %247 = vsyncpa [#allocation4], 1 }
 0x266   :  { %248 = vsyncpa [#allocation6], 1 }

</bundles_post_ra>
